<compile_context>
chip_gen: v5e
topology: v5e:2x2
jax: 0.10.0
libtpu: 0.0.40
codegen_flags: <defaults>
</compile_context>

<pallas_src>
import jax
import jax.numpy as jnp
from jax.experimental import pallas as pl
from jax.experimental.pallas import tpu as pltpu

LATENT_DIM = 64  # hard-coded in the PyTorch module


def _mi_loss_kernel(x_ref, w1_ref, b1_ref, w2_ref, b2_ref, w3_ref, b3_ref,
                    loss_ref):
    """Fused MI-attack MLP + MSE loss.

    x_ref:   [2B, 128] bf16  rows 0:B = [user|pos_item], rows B:2B = [user|neg_item]
    w1_ref:  [128, 256] bf16
    b1_ref:  [1, 256]  f32
    w2_ref:  [256, 64] bf16
    b2_ref:  [1, 64]   f32
    w3_ref:  [1, 64]   f32   row form of the 64 -> 1 projection
    b3_ref:  [1, 1]    f32   (SMEM scalar)
    loss_ref:[1, 1]    f32   (SMEM scalar output)
    """
    m = x_ref.shape[0]
    b = m // 2

    # ---- layer 1: single K=128 MXU matmul, f32 accumulation.
    h1 = jnp.dot(x_ref[...], w1_ref[...],
                 preferred_element_type=jnp.float32)               # [2B, 256]
    h1 = jnp.maximum(h1 + b1_ref[...], 0.0)

    # ---- layer 2: cast activation to the weight dtype only at the matmul.
    h2 = jnp.dot(h1.astype(w2_ref.dtype), w2_ref[...],
                 preferred_element_type=jnp.float32)               # [2B, 64]
    h2 = jnp.maximum(h2 + b2_ref[...], 0.0)

    # ---- layer 3 as VPU mul + lane reduction; numerically stable sigmoid.
    logits = jnp.sum(h2 * w3_ref[...], axis=-1, keepdims=True) + b3_ref[0, 0]
    scores = 0.5 * (jnp.tanh(0.5 * logits) + 1.0)                  # [2B, 1]

    # ---- F.mse_loss(pos, 1) + F.mse_loss(neg, 0), both 'mean' over B elems.
    row = jax.lax.broadcasted_iota(jnp.int32, (m, 1), 0)
    target = jnp.where(row < b, 1.0, 0.0)
    err = scores - target
    loss_ref[0, 0] = jnp.sum(err * err) * (1.0 / b)


def mi_attacker_loss(x, w1, b1, w2, b2, w3_row, b3):
    """x: [2B, 128] concat input (pos rows then neg rows)."""
    vmem = pl.BlockSpec(memory_space=pltpu.MemorySpace.VMEM)
    smem = pl.BlockSpec(memory_space=pltpu.MemorySpace.SMEM)
    out = pl.pallas_call(
        _mi_loss_kernel,
        out_shape=jax.ShapeDtypeStruct((1, 1), jnp.float32),
        in_specs=[vmem, vmem, vmem, vmem, vmem, vmem, smem],
        out_specs=smem,
    )(x, w1, b1, w2, b2, w3_row, b3)
    return out[0, 0]


@jax.jit
def mi_attacker_forward(user_emb, item_emb, params, user_pos, pos_item_pos,
                        neg_item_pos):
    """Mirrors MIAttacker.forward: gather, fused MLP, mse(pos,1)+mse(neg,0)."""
    w1, b1, w2, b2, w3, b3 = params
    latent = user_emb.shape[1]

    user_vec = user_emb[user_pos]                                   # [B, 64]
    item_idx = jnp.concatenate([pos_item_pos, neg_item_pos], axis=0)
    item_vecs = item_emb[item_idx]                                  # [2B, 64]

    # Build the [2B, 128] concat input once in XLA (cheap at small B); feed
    # bf16 matmul operands to the kernel, keep f32 biases / output projection.
    user2 = jnp.concatenate([user_vec, user_vec], axis=0)           # [2B, 64]
    x = jnp.concatenate([user2, item_vecs], axis=1)                 # [2B, 128]

    x_bf = x.astype(jnp.bfloat16)
    w1_bf = w1.astype(jnp.bfloat16)                                 # [128, 256]
    w2_bf = w2.astype(jnp.bfloat16)                                 # [256, 64]
    b1_f = b1.astype(jnp.float32)                                   # [1, 256]
    b2_f = b2.astype(jnp.float32)                                   # [1, 64]
    w3_row = jnp.reshape(w3, (1, latent)).astype(jnp.float32)       # [1, 64]
    b3_s = jnp.reshape(b3, (1, 1)).astype(jnp.float32)              # [1, 1]

    return mi_attacker_loss(x_bf, w1_bf, b1_f, w2_bf, b2_f, w3_row, b3_s)


def init_params(key, latent_dim=LATENT_DIM):
    """Deterministic synthetic init of BPRMF embeddings + MI_model weights."""
    # TODO(synk): BPRMF checkpoint load has no in-script equivalent; embeddings
    # are synthesized deterministically instead.
    keys = jax.random.split(key, 8)
    num_users, num_items = 32, 48
    user_emb = jax.random.normal(keys[0], (num_users, latent_dim), jnp.float32) * 0.1
    item_emb = jax.random.normal(keys[1], (num_items, latent_dim), jnp.float32) * 0.1
    d_in, d_h1, d_h2 = 2 * latent_dim, 4 * latent_dim, latent_dim
    w1 = jax.random.normal(keys[2], (d_in, d_h1), jnp.float32) * (1.0 / jnp.sqrt(d_in))
    b1 = jax.random.normal(keys[3], (1, d_h1), jnp.float32) * 0.01
    w2 = jax.random.normal(keys[4], (d_h1, d_h2), jnp.float32) * (1.0 / jnp.sqrt(d_h1))
    b2 = jax.random.normal(keys[5], (1, d_h2), jnp.float32) * 0.01
    w3 = jax.random.normal(keys[6], (d_h2, 1), jnp.float32) * (1.0 / jnp.sqrt(d_h2))
    b3 = jax.random.normal(keys[7], (1, 1), jnp.float32) * 0.01
    return user_emb, item_emb, (w1, b1, w2, b2, w3, b3)


def _reference_loss(user_emb, item_emb, params, u, pi, ni):
    """Pure-JAX f32 reference mirroring the PyTorch module exactly."""
    w1, b1, w2, b2, w3, b3 = params

    def mlp(x):
        h1 = jnp.maximum(x @ w1 + b1, 0.0)
        h2 = jnp.maximum(h1 @ w2 + b2, 0.0)
        return jax.nn.sigmoid(h2 @ w3 + b3)

    xp = jnp.concatenate([user_emb[u], item_emb[pi]], axis=1)
    xn = jnp.concatenate([user_emb[u], item_emb[ni]], axis=1)
    p, n = mlp(xp), mlp(xn)
    return jnp.mean((p - 1.0) ** 2) + jnp.mean(n ** 2)


if __name__ == "__main__":
    key = jax.random.PRNGKey(0)
    k_init, k_u, k_p, k_n = jax.random.split(key, 4)

    user_emb, item_emb, params = init_params(k_init)

    batch = 8
    user_pos = jax.random.randint(k_u, (batch,), 0, user_emb.shape[0])
    pos_item_pos = jax.random.randint(k_p, (batch,), 0, item_emb.shape[0])
    neg_item_pos = jax.random.randint(k_n, (batch,), 0, item_emb.shape[0])

    loss = mi_attacker_forward(user_emb, item_emb, params,
                               user_pos, pos_item_pos, neg_item_pos)
    loss = jax.block_until_ready(loss)

    ref = _reference_loss(user_emb, item_emb, params,
                          user_pos, pos_item_pos, neg_item_pos)
    # Tolerance relaxed vs. the pure-f32 version because matmul operands are
    # bf16 (f32 accumulation); elementwise math is still f32.
    assert jnp.allclose(loss, ref, rtol=1e-2, atol=1e-2), (loss, ref)

    print("KERNEL_OK")
</pallas_src>

<mosaic_0001>
module attributes {stable_mosaic.version = 11 : i64} {
  func.func @_mi_loss_kernel(%arg0: memref<16x128xbf16, #tpu.memory_space<vmem>>, %arg1: memref<128x256xbf16, #tpu.memory_space<vmem>>, %arg2: memref<1x256xf32, #tpu.memory_space<vmem>>, %arg3: memref<256x64xbf16, #tpu.memory_space<vmem>>, %arg4: memref<1x64xf32, #tpu.memory_space<vmem>>, %arg5: memref<1x64xf32, #tpu.memory_space<vmem>>, %arg6: memref<1x1xf32, #tpu.memory_space<smem>>, %arg7: memref<1x1xf32, #tpu.memory_space<smem>>) attributes {dimension_semantics = [], scalar_prefetch = 0 : i64, scratch_operands = 0 : i64, tpu.core_type = #tpu.core_type<tc>} {
    %c0 = arith.constant 0 : index
    %c0_0 = arith.constant 0 : index
    %0 = vector.load %arg0[%c0, %c0_0] : memref<16x128xbf16, #tpu.memory_space<vmem>>, vector<16x128xbf16>
    %c0_1 = arith.constant 0 : index
    %c0_2 = arith.constant 0 : index
    %1 = vector.load %arg1[%c0_1, %c0_2] : memref<128x256xbf16, #tpu.memory_space<vmem>>, vector<128x256xbf16>
    %cst = arith.constant dense<0.000000e+00> : vector<16x256xf32>
    %2 = tpu.matmul %0, %1, %cst {dimension_numbers = #tpu.dot_dimension_numbers<[1], [0], [0], [1], [0, 0, 1, 1], [], []>} : vector<16x128xbf16>, vector<128x256xbf16>, vector<16x256xf32> -> vector<16x256xf32>
    %c0_3 = arith.constant 0 : index
    %c0_4 = arith.constant 0 : index
    %3 = vector.load %arg2[%c0_3, %c0_4] : memref<1x256xf32, #tpu.memory_space<vmem>>, vector<1x256xf32>
    %4 = vector.broadcast %3 : vector<1x256xf32> to vector<16x256xf32>
    %5 = arith.addf %2, %4 : vector<16x256xf32>
    %cst_5 = arith.constant 0.000000e+00 : f32
    %6 = vector.broadcast %cst_5 : f32 to vector<16x256xf32>
    %7 = arith.maximumf %5, %6 : vector<16x256xf32>
    %8 = arith.truncf %7 : vector<16x256xf32> to vector<16x256xbf16>
    %c0_6 = arith.constant 0 : index
    %c0_7 = arith.constant 0 : index
    %9 = vector.load %arg3[%c0_6, %c0_7] : memref<256x64xbf16, #tpu.memory_space<vmem>>, vector<256x64xbf16>
    %cst_8 = arith.constant dense<0.000000e+00> : vector<16x64xf32>
    %10 = tpu.matmul %8, %9, %cst_8 {dimension_numbers = #tpu.dot_dimension_numbers<[1], [0], [0], [1], [0, 0, 1, 1], [], []>} : vector<16x256xbf16>, vector<256x64xbf16>, vector<16x64xf32> -> vector<16x64xf32>
    %c0_9 = arith.constant 0 : index
    %c0_10 = arith.constant 0 : index
    %11 = vector.load %arg4[%c0_9, %c0_10] : memref<1x64xf32, #tpu.memory_space<vmem>>, vector<1x64xf32>
    %12 = vector.broadcast %11 : vector<1x64xf32> to vector<16x64xf32>
    %13 = arith.addf %10, %12 : vector<16x64xf32>
    %cst_11 = arith.constant 0.000000e+00 : f32
    %14 = vector.broadcast %cst_11 : f32 to vector<16x64xf32>
    %15 = arith.maximumf %13, %14 : vector<16x64xf32>
    %c0_12 = arith.constant 0 : index
    %c0_13 = arith.constant 0 : index
    %16 = vector.load %arg5[%c0_12, %c0_13] : memref<1x64xf32, #tpu.memory_space<vmem>>, vector<1x64xf32>
    %17 = vector.broadcast %16 : vector<1x64xf32> to vector<16x64xf32>
    %18 = arith.mulf %15, %17 : vector<16x64xf32>
    %cst_14 = arith.constant dense<0.000000e+00> : vector<16xf32>
    %19 = vector.multi_reduction <add>, %18, %cst_14 [1] : vector<16x64xf32> to vector<16xf32>
    %20 = vector.shape_cast %19 : vector<16xf32> to vector<16x1xf32>
    %c0_15 = arith.constant 0 : index
    %c0_16 = arith.constant 0 : index
    %21 = memref.load %arg6[%c0_15, %c0_16] : memref<1x1xf32, #tpu.memory_space<smem>>
    %22 = vector.broadcast %21 : f32 to vector<16x1xf32>
    %23 = arith.addf %20, %22 : vector<16x1xf32>
    %cst_17 = arith.constant 5.000000e-01 : f32
    %24 = vector.broadcast %cst_17 : f32 to vector<16x1xf32>
    %25 = arith.mulf %24, %23 : vector<16x1xf32>
    %26 = math.tanh %25 : vector<16x1xf32>
    %cst_18 = arith.constant 1.000000e+00 : f32
    %27 = vector.broadcast %cst_18 : f32 to vector<16x1xf32>
    %28 = arith.addf %26, %27 : vector<16x1xf32>
    %cst_19 = arith.constant 5.000000e-01 : f32
    %29 = vector.broadcast %cst_19 : f32 to vector<16x1xf32>
    %30 = arith.mulf %29, %28 : vector<16x1xf32>
    %31 = tpu.iota {dimensions = array<i32: 0>} : vector<16x1xi32>
    %c8_i32 = arith.constant 8 : i32
    %32 = vector.broadcast %c8_i32 : i32 to vector<16x1xi32>
    %33 = arith.cmpi slt, %31, %32 : vector<16x1xi32>
    %cst_20 = arith.constant 1.000000e+00 : f32
    %cst_21 = arith.constant 0.000000e+00 : f32
    %34 = vector.broadcast %cst_20 : f32 to vector<16x1xf32>
    %35 = vector.broadcast %cst_21 : f32 to vector<16x1xf32>
    %36 = arith.select %33, %34, %35 : vector<16x1xi1>, vector<16x1xf32>
    %37 = arith.subf %30, %36 : vector<16x1xf32>
    %38 = arith.mulf %37, %37 : vector<16x1xf32>
    %39 = vector.shape_cast %38 : vector<16x1xf32> to vector<1x16x1xf32>
    %cst_22 = arith.constant dense<0.000000e+00> : vector<1xf32>
    %40 = vector.multi_reduction <add>, %39, %cst_22 [1, 2] : vector<1x16x1xf32> to vector<1xf32>
    %41 = vector.shape_cast %40 : vector<1xf32> to vector<1x1x1xf32>
    %42 = vector.extract %41[0, 0, 0] : f32 from vector<1x1x1xf32>
    %cst_23 = arith.constant 1.250000e-01 : f32
    %43 = arith.mulf %42, %cst_23 : f32
    %c0_24 = arith.constant 0 : index
    %c0_25 = arith.constant 0 : index
    %44 = memref.load %arg7[%c0_24, %c0_25] : memref<1x1xf32, #tpu.memory_space<smem>>
    memref.store %43, %arg7[%c0_24, %c0_25] : memref<1x1xf32, #tpu.memory_space<smem>>
    return
  }
}

</mosaic_0001>

<bundles_post_ra>
// kernel: mi_attacker_forward.1
= control target key start
LH: loop header
LB: loop body
LE: loop exit
PB: predicated region body
PF: predicated region fallthrough
CT: control target
= control target key end

     0   :  { %s793_s0 = inlined_call_operand.vmem [shape: bf16[16,128], index: 0, kind: input, shape index: {}]   ;;  %s794_s1 = inlined_call_operand.vmem [shape: bf16[128,256], index: 1, kind: input, shape index: {}]   ;;  %s795_s2 = inlined_call_operand.vmem [shape: f32[1,256], index: 2, kind: input, shape index: {}]   ;;  %s796_s3 = inlined_call_operand.vmem [shape: bf16[256,64], index: 3, kind: input, shape index: {}]   ;;  %s797_s4 = inlined_call_operand.vmem [shape: f32[1,64], index: 4, kind: input, shape index: {}]   ;;  %s798_s5 = inlined_call_operand.vmem [shape: f32[1,64], index: 5, kind: input, shape index: {}]   ;;  %s799_s6 = inlined_call_operand.<no memory space> [shape: f32[1,1], index: 6, kind: input, shape index: {}]   ;;  %s800_s7 = inlined_call_operand.hbm [shape: f32[1,1], index: 7, kind: output, shape index: {}]  }
   0x1   :  { %v463_v0 = vld [vmem:[%s794_s1 + $0x70] sm:$0xf]  ;;  %v550_v1 = vld [vmem:[%s794_s1 + $0x74] sm:$0xf0]  ;;  %v549_v2 = vld [vmem:[%s794_s1 + $0x74] sm:$0xf] }
   0x2   :  { %v464_v3 = vor.u32 %v550_v1, %v463_v0  ;;  %v465_v4 = vld [vmem:[%s794_s1 + $0x78] sm:$0xf0]  ;;  %v455_v5 = vld [vmem:[%s794_s1 + $0x60] sm:$0xf]  ;;  %v548_v6 = vld [vmem:[%s794_s1 + $0x64] sm:$0xf0] }
   0x3   :  { %v468_v7 = vor.u32 %v549_v2, %v465_v4  ;;  %v547_v8 = vld [vmem:[%s794_s1 + $0x64] sm:$0xf]  ;;  %v457_v9 = vld [vmem:[%s794_s1 + $0x68] sm:$0xf0]  ;;  %v456_v10 = vor.u32 %v548_v6, %v455_v5  ;;  %v447_v12 = vld [vmem:[%s794_s1 + $0x50] sm:$0xf] }
   0x4   :  { %138 = vmatpush.bf16.msra.mxu0 %v464_v3  ;;  %v460_v11 = vor.u32 %v547_v8, %v457_v9  ;;  %v546_v13 = vld [vmem:[%s794_s1 + $0x54] sm:$0xf0]  ;;  %v545_v14 = vld [vmem:[%s794_s1 + $0x54] sm:$0xf]  ;;  %v449_v15 = vld [vmem:[%s794_s1 + $0x58] sm:$0xf0] }
   0x5   :  { %152 = vmatpush.bf16.msra.mxu1 %v468_v7  ;;  %v448_v16 = vor.u32 %v546_v13, %v447_v12  ;;  %v452_v17 = vor.u32 %v545_v14, %v449_v15  ;;  %v439_v18 = vld [vmem:[%s794_s1 + $0x40] sm:$0xf]  ;;  %v544_v19 = vld [vmem:[%s794_s1 + $0x44] sm:$0xf0]  ;;  %v543_v20 = vld [vmem:[%s794_s1 + $0x44] sm:$0xf] }
   0x6   :  { %v441_v21 = vld [vmem:[%s794_s1 + $0x48] sm:$0xf0]  ;;  %v440_v22 = vor.u32 %v544_v19, %v439_v18  ;;  %v558_v23 = vld [vmem:[%s796_s3 + $0x38] sm:$0xff]  ;;  %v431_v26 = vld [vmem:[%s794_s1 + $0x30] sm:$0xf] }
   0x7   :  { %v566_v24 = vld [vmem:[%s796_s3 + $0x78] sm:$0xff]  ;;  %v444_v25 = vor.u32 %v543_v20, %v441_v21  ;;  %v541_v28 = vld [vmem:[%s794_s1 + $0x34] sm:$0xf]  ;;  %304 = vmatpush.bf16.msra.mxu2 %v558_v23 }
   0x8   :  { %139 = vmatpush.bf16.msra.mxu0 %v456_v10  ;;  %v542_v27 = vld [vmem:[%s794_s1 + $0x34] sm:$0xf0]  ;;  %v433_v29 = vld [vmem:[%s794_s1 + $0x38] sm:$0xf0]  ;;  %318 = vmatpush.bf16.msra.mxu3 %v566_v24  ;;  %v557_v30 = vld [vmem:[%s796_s3 + $0x30] sm:$0xff] }
   0x9   :  { %153 = vmatpush.bf16.msra.mxu1 %v460_v11  ;;  %v565_v31 = vld [vmem:[%s796_s3 + $0x70] sm:$0xff]  ;;  %v432_v32 = vor.u32 %v542_v27, %v431_v26 }
   0xc   :  { %140 = vmatpush.bf16.msra.mxu0 %v448_v16 }
   0xd   :  { %154 = vmatpush.bf16.msra.mxu1 %v452_v17 }
  0x10   :  { %141 = vmatpush.bf16.msra.mxu0 %v440_v22 }
  0x11   :  { %13 = vsyncpa [#allocation4], 0  ;;  %155 = vmatpush.bf16.msra.mxu1 %v444_v25  ;;  %v436_v33 = vor.u32 %v541_v28, %v433_v29  ;;  %v423_v34 = vld [vmem:[%s794_s1 + $0x20] sm:$0xf]  ;;  %v540_v35 = vld [vmem:[%s794_s1 + $0x24] sm:$0xf0]  ;;  %305 = vmatpush.bf16.msra.mxu2 %v557_v30 }
  0x12   :  { %v539_v36 = vld [vmem:[%s794_s1 + $0x24] sm:$0xf]  ;;  %v425_v37 = vld [vmem:[%s794_s1 + $0x28] sm:$0xf0]  ;;  %319 = vmatpush.bf16.msra.mxu3 %v565_v31  ;;  %v424_v40 = vor.u32 %v540_v35, %v423_v34  ;;  %v415_v42 = vld [vmem:[%s794_s1 + $0x10] sm:$0xf]  ;;  %v348_v34 = vstv %s799_s6 }
  0x13   :  { %v556_v38 = vld [vmem:[%s796_s3 + $0x28] sm:$0xff]  ;;  %v428_v41 = vor.u32 %v539_v36, %v425_v37  ;;  %v538_v43 = vld [vmem:[%s794_s1 + $0x14] sm:$0xf0]  ;;  %v537_v44 = vld [vmem:[%s794_s1 + $0x14] sm:$0xf]  ;;  %vm340_vm0 = vcmask 523264  }
  0x14   :  { %v564_v39 = vld [vmem:[%s796_s3 + $0x68] sm:$0xff]  ;;  %142 = vmatpush.bf16.msra.mxu0 %v432_v32  ;;  %v417_v45 = vld [vmem:[%s794_s1 + $0x18] sm:$0xf0]  ;;  %v555_v46 = vld [vmem:[%s796_s3 + $0x20] sm:$0xff]  ;;  %v416_v48 = vor.u32 %v538_v43, %v415_v42  ;;  %vm370_vm1 = vcmask 7168   ;;  %s391_s10 = sshll.u32 %s800_s7, 4  ;;  %s392_s10 = int_to_ptr.hbm [resolvable:$true] %s391_s10 }
  0x15   :  { %156 = vmatpush.bf16.msra.mxu1 %v436_v33  ;;  %306 = vmatpush.bf16.msra.mxu2 %v556_v38  ;;  %v563_v47 = vld [vmem:[%s796_s3 + $0x60] sm:$0xff]  ;;  %v420_v49 = vor.u32 %v537_v44, %v417_v45  ;;  %v536_v51 = vld [vmem:[%s794_s1 + $0x4] sm:$0xf0]  ;;  %v409_v53 = vld [vmem:[%s794_s1 + $0x8] sm:$0xf0]  ;;  %s590_s13 = smov [#allocation3]  }
  0x16   :  { %320 = vmatpush.bf16.msra.mxu3 %v564_v39  ;;  %v407_v50 = vld [vmem:[%s794_s1] sm:$0xf]  ;;  %v535_v52 = vld [vmem:[%s794_s1 + $0x4] sm:$0xf]  ;;  %v554_v57 = vld [vmem:[%s796_s3 + $0x18] sm:$0xff] }
  0x17   :  { %v408_v54 = vor.u32 %v536_v51, %v407_v50  ;;  %v412_v55 = vor.u32 %v535_v52, %v409_v53  ;;  %v534_v56 = vld [vmem:[%s793_s0] sm:$0xff]  ;;  %v562_v58 = vld [vmem:[%s796_s3 + $0x58] sm:$0xff]  ;;  %v553_v59 = vld [vmem:[%s796_s3 + $0x10] sm:$0xff] }
  0x18   :  { %143 = vmatpush.bf16.msra.mxu0 %v424_v40  ;;  %v561_v60 = vld [vmem:[%s796_s3 + $0x50] sm:$0xff]  ;;  %v552_v61 = vld [vmem:[%s796_s3 + $0x8] sm:$0xff]  ;;  %v551_v63 = vld [vmem:[%s796_s3] sm:$0xff] }
  0x19   :  { %157 = vmatpush.bf16.msra.mxu1 %v428_v41  ;;  %307 = vmatpush.bf16.msra.mxu2 %v555_v46  ;;  %v560_v62 = vld [vmem:[%s796_s3 + $0x48] sm:$0xff]  ;;  %v559_v0 = vld [vmem:[%s796_s3 + $0x40] sm:$0xff] }
  0x1a   :  { %321 = vmatpush.bf16.msra.mxu3 %v563_v47  ;;  %v46_v1 = vld [vmem:[%s795_s2] sm:$0x3] }
  0x1b   :  { %v48_v4 = vperm.slane %v46_v1, 0  ;;  %v49_v5 = vperm.slane %v46_v1, 1  ;;  %v570_v18 = vld [vmem:[%s797_s4] ss:$0 sm:$0xff] }
  0x1c   :  { %144 = vmatpush.bf16.msra.mxu0 %v416_v48  ;;  %v571_v23 = vld [vmem:[%s798_s5] ss:$0 sm:$0xff] }
  0x1d   :  { %158 = vmatpush.bf16.msra.mxu1 %v420_v49  ;;  %308 = vmatpush.bf16.msra.mxu2 %v554_v57 }
  0x1e   :  { %322 = vmatpush.bf16.msra.mxu3 %v562_v58 }
  0x20   :  { %145 = vmatpush.bf16.msra.mxu0 %v408_v54 }
  0x21   :  { %159 = vmatpush.bf16.msra.mxu1 %v412_v55  ;;  %309 = vmatpush.bf16.msra.mxu2 %v553_v59 }
  0x22   :  { %323 = vmatpush.bf16.msra.mxu3 %v561_v60 }
  0x23   :  { %146 = vmatmul.bf16.vlgmr.msra.gmra.mxu0 %v534_v56 }
  0x24   :  { %160 = vmatmul.bf16.vlgmr.msra.gmra.mxu1 %v534_v56 }
  0x25   :  { %310 = vmatpush.bf16.msra.mxu2 %v552_v61 }
  0x26   :  { %324 = vmatpush.bf16.msra.mxu3 %v560_v62 }
  0x29   :  { %311 = vmatpush.bf16.msra.mxu2 %v551_v63 }
  0x2a   :  { %325 = vmatpush.bf16.msra.mxu3 %v559_v0 }
  0xa0   :  { %v147_v2 = vpop.f32.mrf.mxu0 }
  0xa1   :  { %v161_v3 = vpop.f32.mrf.mxu1  ;;  %v148_v6 = vadd.f32 %v147_v2, %v48_v4 }
  0xa2   :  { %v162_v7 = vadd.f32 %v161_v3, %v49_v5 }
  0xa3   :  { %v166_v12 = vmax.f32 %v148_v6, 0.0 }
  0xa4   :  { %v167_v14 = vmax.f32 %v162_v7, 0.0 }
  0xa8   :  { %v149_v8 = vpop.f32.mrf.mxu0 }
  0xa9   :  { %v150_v9 = vadd.f32 %v149_v8, %v48_v4  ;;  %v163_v10 = vpop.f32.mrf.mxu1 }
  0xaa   :  { %v164_v11 = vadd.f32 %v163_v10, %v49_v5 }
  0xab   :  { %v168_v13 = vmax.f32 %v150_v9, 0.0 }
  0xac   :  { %v169_v15 = vmax.f32 %v164_v11, 0.0 }
  0xad   :  { %v170_v16 = vpack.c.bf16 %v168_v13, %v166_v12 }
  0xae   :  { %v171_v17 = vpack.c.bf16 %v169_v15, %v167_v14 }
  0xaf   :  { %312 = vmatmul.bf16.vlgmr.msra.gmra.mxu2 %v170_v16 }
  0xb0   :  { %326 = vmatmul.bf16.vlgmr.msra.gmra.mxu3 %v171_v17 }
 0x132   :  { %v313_v19 = vpop.f32.mrf.mxu2 }
 0x133   :  { %v314_v20 = vadd.f32 %v570_v18, %v313_v19  ;;  %v327_v21 = vpop.f32.mrf.mxu3 }
 0x135   :  { %v328_v22 = vadd.f32 %v327_v21, %v314_v20 }
 0x137   :  { %v332_v24 = vmax.f32 %v328_v22, 0.0 }
 0x139   :  { %v338_v25 = vmul.f32 %v571_v23, %v332_v24 }
 0x13a   :  { %v315_v26 = vpop.f32.mrf.mxu2 }
 0x13b   :  { %v316_v27 = vadd.f32 %v570_v18, %v315_v26  ;;  %v341_v28 = vsel %vm340_vm0, %v338_v25, 0.0  ;;  %v329_v29 = vpop.f32.mrf.mxu3 }
 0x13c   :  { %342 = vadd.xlane.f32.xlu0 %v341_v28 }
 0x13d   :  { %v330_v30 = vadd.f32 %v329_v29, %v316_v27 }
 0x13f   :  { %v333_v31 = vmax.f32 %v330_v30, 0.0 }
 0x141   :  { %v339_v32 = vmul.f32 %v571_v23, %v333_v31 }
 0x143   :  { %v344_v33 = vsel %vm340_vm0, %v339_v32, 0.0 }
 0x144   :  { %345 = vadd.xlane.f32.xlu0 %v344_v33 }
 0x1af   :  { %v343_v35 = vpop.xlane.xlu0 %342 }
 0x1b0   :  { %v349_v36 = vadd.f32 %v348_v34, %v343_v35 }
 0x1b2   :  { %v351_v37 = vmul.f32 0.5, %v349_v36 }
 0x1b4   :  { %572 = vtanh.f32 %v351_v37 }
 0x1b7   :  { %v346_v38 = vpop.xlane.xlu0 %345 }
 0x1b8   :  { %v350_v39 = vadd.f32 %v348_v34, %v346_v38 }
 0x1ba   :  { %v573_v40 = vpop.eup %572  ;;  %v352_v41 = vmul.f32 0.5, %v350_v39 }
 0x1bb   :  { %v355_v42 = vadd.f32 1.0, %v573_v40 }
 0x1bc   :  { %574 = vtanh.f32 %v352_v41 }
 0x1bd   :  { %v357_v43 = vmul.f32 0.5, %v355_v42 }
 0x1bf   :  { %v533_v44 = vadd.f32 -1.0, %v357_v43 }
 0x1c1   :  { %v368_v48 = vmul.f32 %v533_v44, %v533_v44 }
 0x1c2   :  { %v575_v45 = vpop.eup %574 }
 0x1c3   :  { %v356_v46 = vadd.f32 1.0, %v575_v45  ;;  %v371_v50 = vsel %vm370_vm1, %v368_v48, 0.0 }
 0x1c5   :  { %v358_v47 = vmul.f32 0.5, %v356_v46 }
 0x1c7   :  { %v369_v49 = vmul.f32 %v358_v47, %v358_v47 }
 0x1c9   :  { %v372_v51 = vsel %vm370_vm1, %v369_v49, 0.0 }
 0x1ca   :  { %v373_v52 = vadd.f32 %v372_v51, %v371_v50 }
 0x1cc   :  { %374 = vadd.xlane.f32.xlu1 %v373_v52 }
 0x23f   :  { %v375_v53 = vpop.xlane.xlu1 %374 }
 0x240   :  { %v376_v54 = vrot.slane %v375_v53, 4 }
 0x242   :  { %v377_v55 = vadd.f32 %v376_v54, %v375_v53 }
 0x244   :  { %v378_v56 = vrot.slane %v377_v55, 2 }
 0x246   :  { %v379_v57 = vadd.f32 %v378_v56, %v377_v55 }
 0x248   :  { %v380_v58 = vrot.slane %v379_v57, 1 }
 0x24a   :  { %v381_v59 = vadd.f32 %v380_v58, %v379_v57 }
 0x24c   :  { %567 = vpush %v381_v59 }
 0x27d   :  { %s568_s11 = spop %567 }
 0x27e   :  { %s383_s12 = smul.f32 0.125, %s568_s11 }
 0x280   :  { %385 = sst [smem:[#allocation3]] %s383_s12 }
 0x281   :  { %394 = dma.smem_to_hbm %s590_s13, 16, %s392_s10, [#allocation4]  }
 0x282   :  { %588 = dma.done.wait [#allocation4], 16  }
 0x283   :  { %589 = vsyncadd [#allocation4], 4294967280 }
 0x284   :  { %399 = sfence }
 0x285   :  { %400 = vsyncpa [#allocation4], 1 }

</bundles_post_ra>
